<compile_context>
chip_gen: v7x
topology: tpu7x:2x2x1
jax: 0.10.0
libtpu: 0.0.40
codegen_flags: <defaults>
</compile_context>

<pallas_src>
import functools
import math

import jax
import jax.numpy as jnp
from jax.experimental import pallas as pl
from jax.experimental.pallas import tpu as pltpu

K = 10  # proxies per class (fixed in LSCLinear.__init__)


def _round_up(x, m):
    return (x + m - 1) // m * m


def _normalize(v, axis=-1, eps=1e-12):
    # matches torch.nn.functional.normalize(p=2, dim=axis, eps=1e-12)
    n = jnp.sqrt(jnp.sum(v * v, axis=axis, keepdims=True))
    return v / jnp.maximum(n, eps)


def _vmem_budget_bytes():
    """75% of physical VMEM when queryable; conservative 48 MiB otherwise."""
    try:
        cap = pltpu.get_tpu_info().vmem_capacity_bytes
        return int(cap * 3 // 4)
    except Exception:
        return 48 * 1024 * 1024


def _vmem_limit(need, budget):
    lim = int(min(budget, max(2 * need, 32 * 1024 * 1024)))
    return max(lim, int(need))


def _resident_need(bb, in_pad, bn, itemsize):
    return (2 * bb * in_pad * itemsize        # double-buffered x tiles
            + 2 * in_pad * K * bn * itemsize  # double-buffered weight tiles
            + 2 * bb * bn * 4                 # double-buffered f32 output tiles
            + 2 * bb * K * bn * 4)            # f32 matmul result + epilogue temps


def _reduce_need(bb, bk, bn, itemsize):
    return (2 * bb * bk * itemsize            # double-buffered x tiles
            + 2 * bk * K * bn * itemsize      # double-buffered weight tiles
            + 2 * bb * bn * 4                 # double-buffered f32 output tiles
            + 2 * bb * K * bn * 4)            # f32 acc scratch + epilogue temps


# ---------------------------------------------------------------------------
# Kernels
# ---------------------------------------------------------------------------

def _proxy_softmax(acc, tn, exact_recip):
    """Two-pass softmax-weighted mean over the K proxy slabs of one class tile.

    acc: (bb, K*tn) f32 of raw x·w products for unit-norm x and w, so the
    stable squared cosine distance is clamp(2 - 2*p, 0) and similarity is its
    negation.
    """
    sims = [-jnp.maximum(2.0 - 2.0 * acc[:, k * tn:(k + 1) * tn], 0.0)
            for k in range(K)]
    m = sims[0]
    for s in sims[1:]:
        m = jnp.maximum(m, s)
    num = jnp.zeros_like(m)
    denom = jnp.zeros_like(m)
    for s in sims:
        e = jnp.exp(s - m)
        num = num + s * e
        denom = denom + e
    if exact_recip:
        return num / denom
    return num * pl.reciprocal(denom, approx=True)


def _lsc_resident_kernel(x_ref, w_ref, out_ref, *, exact_recip):
    """Weight-resident path: full reduction in one wide MXU dot per block."""
    acc = jnp.dot(x_ref[...], w_ref[...], preferred_element_type=jnp.float32)
    out_ref[...] = _proxy_softmax(acc, out_ref.shape[-1], exact_recip)


def _lsc_reduce_kernel(x_ref, w_ref, out_ref, acc_ref, *, exact_recip):
    """Chunked-reduction path: grid axis 2 iterates in_feature chunks."""
    kk = pl.program_id(2)
    prod = jnp.dot(x_ref[...], w_ref[...], preferred_element_type=jnp.float32)

    @pl.when(kk == 0)
    def _():
        acc_ref[...] = prod          # direct write: no zero-init store+load

    @pl.when(kk > 0)
    def _():
        acc_ref[...] += prod

    @pl.when(kk == pl.num_programs(2) - 1)
    def _():
        out_ref[...] = _proxy_softmax(acc_ref[...], out_ref.shape[-1],
                                      exact_recip)


# ---------------------------------------------------------------------------
# Weight packing (hoistable out of the forward path)
# ---------------------------------------------------------------------------

def pack_lsc_weights(weight1, weight2, *, nc_tile, in_pad, compute_dtype):
    """Normalize + pack both proxy weight matrices for the kernel.

    Returns w_packed of shape (in_pad, nc_tiles * K * nc_tile): the column
    block for class-tile j is [j*K*TN : (j+1)*K*TN] and, inside it, proxy k
    occupies lanes [k*TN : (k+1)*TN].  PyTorch weight row c*K + k maps to
    (class c, proxy k).
    """
    in_features = weight1.shape[1]
    out1 = weight1.shape[0] // K
    out2 = weight2.shape[0] // K
    nc = out1 + out2
    nc_pad = _round_up(nc, nc_tile)
    nc_tiles = nc_pad // nc_tile

    w1n = _normalize(weight1.astype(jnp.float32))
    w2n = _normalize(weight2.astype(jnp.float32))
    # (K*out, in) -> (out, K, in) -> (K, in, out)
    w1p = jnp.transpose(w1n.reshape(out1, K, in_features), (1, 2, 0))
    w2p = jnp.transpose(w2n.reshape(out2, K, in_features), (1, 2, 0))
    w = jnp.concatenate([w1p, w2p], axis=-1)                      # (K, in, nc)
    w = jnp.pad(w, ((0, 0), (0, in_pad - in_features), (0, nc_pad - nc)))
    # Block-interleave classes so each class tile's K proxy slabs are adjacent.
    w = w.reshape(K, in_pad, nc_tiles, nc_tile)
    w = jnp.transpose(w, (1, 2, 0, 3)).reshape(in_pad, nc_tiles * K * nc_tile)
    return w.astype(compute_dtype), nc, nc_pad


# ---------------------------------------------------------------------------
# Forward builders
# ---------------------------------------------------------------------------

def make_split_lsc_forward(weight1, weight2, *, compute_dtype=jnp.bfloat16,
                           block_b=512, block_n=256, block_k=1024,
                           weight_resident=None, vmem_budget_bytes=None):
    """Pack the (static) weights once and return a reusable forward(x).

    This hoists normalization/packing out of the per-call path; callers that
    update weights rarely should cache the returned closure.
    """
    in_features = weight1.shape[1]
    out1 = weight1.shape[0] // K
    out2 = weight2.shape[0] // K
    nc = out1 + out2

    budget = (int(vmem_budget_bytes) if vmem_budget_bytes
              else _vmem_budget_bytes())
    itemsize = jnp.dtype(compute_dtype).itemsize

    bn = min(_round_up(block_n, 128), _round_up(nc, 128))
    bb_max = _round_up(max(block_b, 16), 16)     # primary tuning knob
    in_pad_full = _round_up(in_features, 128)

    resident = weight_resident
    if resident is None:
        resident = _resident_need(bb_max, in_pad_full, bn, itemsize) <= budget

    if resident:
        bk = in_pad = in_pad_full
    else:
        bk = min(_round_up(max(block_k, 128), 128), in_pad_full)
        while _reduce_need(bb_max, bk, bn, itemsize) > budget and bk > 128:
            bk = _round_up(max(bk // 2, 128), 128)
        in_pad = _round_up(in_features, bk)

    w_packed, nc, nc_pad = pack_lsc_weights(
        weight1, weight2, nc_tile=bn, in_pad=in_pad,
        compute_dtype=compute_dtype)

    exact_recip = jnp.dtype(compute_dtype) == jnp.dtype(jnp.float32)

    def forward(x):
        bs = x.shape[0]
        bb = min(bb_max, _round_up(bs, 16))
        bs_pad = _round_up(bs, bb)

        xn = _normalize(x.astype(jnp.float32))
        xp = jnp.pad(xn, ((0, bs_pad - bs), (0, in_pad - in_features)))
        xp = xp.astype(compute_dtype)

        if resident:
            need = _resident_need(bb, in_pad, bn, itemsize)
            grid = (nc_pad // bn, bs_pad // bb)   # class tiles OUTER
            out = pl.pallas_call(
                functools.partial(_lsc_resident_kernel,
                                  exact_recip=exact_recip),
                out_shape=jax.ShapeDtypeStruct((bs_pad, nc_pad), jnp.float32),
                grid_spec=pltpu.PrefetchScalarGridSpec(
                    num_scalar_prefetch=0,
                    grid=grid,
                    in_specs=[
                        # x block: batch tile i, full in_pad reduction width
                        pl.BlockSpec((bb, in_pad), lambda j, i: (i, 0)),
                        # weight block depends only on the class tile j ->
                        # fetched once, resident across all batch tiles.
                        pl.BlockSpec((in_pad, K * bn), lambda j, i: (0, j)),
                    ],
                    out_specs=pl.BlockSpec((bb, bn), lambda j, i: (i, j)),
                ),
                compiler_params=pltpu.CompilerParams(
                    dimension_semantics=("parallel", "parallel"),
                    vmem_limit_bytes=_vmem_limit(need, budget),
                ),
            )(xp, w_packed)
        else:
            need = _reduce_need(bb, bk, bn, itemsize)
            grid = (bs_pad // bb, nc_pad // bn, in_pad // bk)
            out = pl.pallas_call(
                functools.partial(_lsc_reduce_kernel,
                                  exact_recip=exact_recip),
                out_shape=jax.ShapeDtypeStruct((bs_pad, nc_pad), jnp.float32),
                grid_spec=pltpu.PrefetchScalarGridSpec(
                    num_scalar_prefetch=0,
                    grid=grid,
                    in_specs=[
                        pl.BlockSpec((bb, bk), lambda i, j, k: (i, k)),
                        pl.BlockSpec((bk, K * bn), lambda i, j, k: (k, j)),
                    ],
                    out_specs=pl.BlockSpec((bb, bn), lambda i, j, k: (i, j)),
                    scratch_shapes=[pltpu.VMEM((bb, K * bn), jnp.float32)],
                ),
                compiler_params=pltpu.CompilerParams(
                    dimension_semantics=("parallel", "parallel", "arbitrary"),
                    vmem_limit_bytes=_vmem_limit(need, budget),
                ),
            )(xp, w_packed)

        return out[:bs, :nc]

    return forward


def split_lsc_linear(x, weight1, weight2, **kwargs):
    """One-shot convenience wrapper (packs weights on every call).

    x:        (bs, in_features)
    weight_i: (K * out_features_i, in_features)
    returns   (bs, out_features1 + out_features2) float32
    """
    return make_split_lsc_forward(weight1, weight2, **kwargs)(x)


# ---------------------------------------------------------------------------
# Pure-JAX reference (transcription of the PyTorch module) + tests
# ---------------------------------------------------------------------------

def _reference(x, weight1, weight2):
    def lsc(x, w):
        a = _normalize(x)
        b = _normalize(w)
        mat = jnp.concatenate([a, b], axis=0)
        sq = jnp.sum(mat ** 2, axis=1, keepdims=True)
        d = sq + sq.T - 2.0 * jnp.dot(mat, mat.T,
                                      precision=jax.lax.Precision.HIGHEST)
        d = jnp.clip(d, 0.0, None)
        err = d <= 0.0
        d = d * (~err).astype(d.dtype)
        d = d * (1.0 - jnp.eye(d.shape[0], dtype=d.dtype))
        d = d[: a.shape[0], a.shape[0]:]
        sim = -d
        bs, nck = sim.shape
        s = sim.reshape(bs, nck // K, K)
        att = jax.nn.softmax(s, axis=-1)
        return jnp.sum(s * att, axis=-1)

    return jnp.concatenate([lsc(x, weight1), lsc(x, weight2)], axis=1)


def _run_case(key, bs, in_features, out1, out2, **kw):
    kx, kw1, kw2 = jax.random.split(key, 3)
    # kaiming_normal_(nonlinearity='linear'): std = 1/sqrt(fan_in)
    std = 1.0 / math.sqrt(in_features)
    x = jax.random.normal(kx, (bs, in_features), dtype=jnp.float32)
    w1 = std * jax.random.normal(kw1, (K * out1, in_features), dtype=jnp.float32)
    w2 = std * jax.random.normal(kw2, (K * out2, in_features), dtype=jnp.float32)

    ref = _reference(x, w1, w2)

    # Hoisted packing: build the forward once per dtype, then call it.
    fwd_bf16 = make_split_lsc_forward(w1, w2, compute_dtype=jnp.bfloat16, **kw)
    out_bf16 = jax.block_until_ready(fwd_bf16(x))
    assert out_bf16.shape == (bs, out1 + out2), out_bf16.shape
    err_bf16 = float(jnp.max(jnp.abs(out_bf16 - ref)))
    assert jnp.allclose(out_bf16, ref, rtol=2e-2, atol=2e-2), (
        f"bf16 max abs err {err_bf16}")

    fwd_f32 = make_split_lsc_forward(w1, w2, compute_dtype=jnp.float32, **kw)
    out_f32 = jax.block_until_ready(fwd_f32(x))
    err_f32 = float(jnp.max(jnp.abs(out_f32 - ref)))
    assert jnp.allclose(out_f32, ref, rtol=5e-3, atol=5e-3), (
        f"f32 max abs err {err_f32}")


if __name__ == "__main__":
    key = jax.random.PRNGKey(0)
    k1, k2, k3 = jax.random.split(key, 3)

    # Case 1: tiny module shapes — weight-resident path, single-tile grid.
    _run_case(k1, bs=4, in_features=32, out1=4, out2=6)

    # Case 2: multi-tile resident grid (2 class tiles x 3 batch tiles) to
    # exercise packing / tiling / epilogue across the grid.
    _run_case(k2, bs=48, in_features=160, out1=100, out2=40,
              block_b=16, block_n=128)

    # Case 3: force the chunked-reduction fallback (accumulator scratch,
    # first-chunk direct write, last-chunk epilogue) with 2 in-chunks.
    _run_case(k3, bs=32, in_features=256, out1=20, out2=12,
              block_b=16, block_n=128, block_k=128, weight_resident=False)

    print("KERNEL_OK")
</pallas_src>

<mosaic_0001>
module attributes {stable_mosaic.version = 11 : i64} {
  func.func @_lsc_resident_kernel(%arg0: i32, %arg1: i32, %arg2: memref<16x128xbf16, #tpu.memory_space<vmem>>, %arg3: memref<128x1280xbf16, #tpu.memory_space<vmem>>, %arg4: memref<16x128xf32, #tpu.memory_space<vmem>>) attributes {dimension_semantics = [#tpu.dimension_semantics<parallel>, #tpu.dimension_semantics<parallel>], iteration_bounds = array<i64: 1, 1>, scalar_prefetch = 0 : i64, scratch_operands = 0 : i64, tpu.core_type = #tpu.core_type<tc>, window_params = [{transform_indices = @transform_0, window_bounds = array<i64: 16, 128>}, {transform_indices = @transform_1, window_bounds = array<i64: 128, 1280>}, {transform_indices = @transform_2, window_bounds = array<i64: 16, 128>}]} {
    %c0 = arith.constant 0 : index
    %c0_0 = arith.constant 0 : index
    %0 = vector.load %arg2[%c0, %c0_0] : memref<16x128xbf16, #tpu.memory_space<vmem>>, vector<16x128xbf16>
    %c0_1 = arith.constant 0 : index
    %c0_2 = arith.constant 0 : index
    %1 = vector.load %arg3[%c0_1, %c0_2] : memref<128x1280xbf16, #tpu.memory_space<vmem>>, vector<128x1280xbf16>
    %cst = arith.constant dense<0.000000e+00> : vector<16x1280xf32>
    %2 = tpu.matmul %0, %1, %cst {dimension_numbers = #tpu.dot_dimension_numbers<[1], [0], [0], [1], [0, 0, 1, 1], [], []>} : vector<16x128xbf16>, vector<128x1280xbf16>, vector<16x1280xf32> -> vector<16x1280xf32>
    %3 = vector.extract_strided_slice %2 {offsets = [0, 0], sizes = [16, 128], strides = [1, 1]} : vector<16x1280xf32> to vector<16x128xf32>
    %cst_3 = arith.constant 2.000000e+00 : f32
    %4 = vector.broadcast %cst_3 : f32 to vector<16x128xf32>
    %5 = arith.mulf %4, %3 : vector<16x128xf32>
    %cst_4 = arith.constant 2.000000e+00 : f32
    %6 = vector.broadcast %cst_4 : f32 to vector<16x128xf32>
    %7 = arith.subf %6, %5 : vector<16x128xf32>
    %cst_5 = arith.constant 0.000000e+00 : f32
    %8 = vector.broadcast %cst_5 : f32 to vector<16x128xf32>
    %9 = arith.maximumf %7, %8 : vector<16x128xf32>
    %cst_6 = arith.constant 0.000000e+00 : f32
    %10 = vector.broadcast %cst_6 : f32 to vector<16x128xf32>
    %11 = arith.subf %10, %9 : vector<16x128xf32>
    %12 = vector.extract_strided_slice %2 {offsets = [0, 128], sizes = [16, 128], strides = [1, 1]} : vector<16x1280xf32> to vector<16x128xf32>
    %cst_7 = arith.constant 2.000000e+00 : f32
    %13 = vector.broadcast %cst_7 : f32 to vector<16x128xf32>
    %14 = arith.mulf %13, %12 : vector<16x128xf32>
    %cst_8 = arith.constant 2.000000e+00 : f32
    %15 = vector.broadcast %cst_8 : f32 to vector<16x128xf32>
    %16 = arith.subf %15, %14 : vector<16x128xf32>
    %cst_9 = arith.constant 0.000000e+00 : f32
    %17 = vector.broadcast %cst_9 : f32 to vector<16x128xf32>
    %18 = arith.maximumf %16, %17 : vector<16x128xf32>
    %cst_10 = arith.constant 0.000000e+00 : f32
    %19 = vector.broadcast %cst_10 : f32 to vector<16x128xf32>
    %20 = arith.subf %19, %18 : vector<16x128xf32>
    %21 = vector.extract_strided_slice %2 {offsets = [0, 256], sizes = [16, 128], strides = [1, 1]} : vector<16x1280xf32> to vector<16x128xf32>
    %cst_11 = arith.constant 2.000000e+00 : f32
    %22 = vector.broadcast %cst_11 : f32 to vector<16x128xf32>
    %23 = arith.mulf %22, %21 : vector<16x128xf32>
    %cst_12 = arith.constant 2.000000e+00 : f32
    %24 = vector.broadcast %cst_12 : f32 to vector<16x128xf32>
    %25 = arith.subf %24, %23 : vector<16x128xf32>
    %cst_13 = arith.constant 0.000000e+00 : f32
    %26 = vector.broadcast %cst_13 : f32 to vector<16x128xf32>
    %27 = arith.maximumf %25, %26 : vector<16x128xf32>
    %cst_14 = arith.constant 0.000000e+00 : f32
    %28 = vector.broadcast %cst_14 : f32 to vector<16x128xf32>
    %29 = arith.subf %28, %27 : vector<16x128xf32>
    %30 = vector.extract_strided_slice %2 {offsets = [0, 384], sizes = [16, 128], strides = [1, 1]} : vector<16x1280xf32> to vector<16x128xf32>
    %cst_15 = arith.constant 2.000000e+00 : f32
    %31 = vector.broadcast %cst_15 : f32 to vector<16x128xf32>
    %32 = arith.mulf %31, %30 : vector<16x128xf32>
    %cst_16 = arith.constant 2.000000e+00 : f32
    %33 = vector.broadcast %cst_16 : f32 to vector<16x128xf32>
    %34 = arith.subf %33, %32 : vector<16x128xf32>
    %cst_17 = arith.constant 0.000000e+00 : f32
    %35 = vector.broadcast %cst_17 : f32 to vector<16x128xf32>
    %36 = arith.maximumf %34, %35 : vector<16x128xf32>
    %cst_18 = arith.constant 0.000000e+00 : f32
    %37 = vector.broadcast %cst_18 : f32 to vector<16x128xf32>
    %38 = arith.subf %37, %36 : vector<16x128xf32>
    %39 = vector.extract_strided_slice %2 {offsets = [0, 512], sizes = [16, 128], strides = [1, 1]} : vector<16x1280xf32> to vector<16x128xf32>
    %cst_19 = arith.constant 2.000000e+00 : f32
    %40 = vector.broadcast %cst_19 : f32 to vector<16x128xf32>
    %41 = arith.mulf %40, %39 : vector<16x128xf32>
    %cst_20 = arith.constant 2.000000e+00 : f32
    %42 = vector.broadcast %cst_20 : f32 to vector<16x128xf32>
    %43 = arith.subf %42, %41 : vector<16x128xf32>
    %cst_21 = arith.constant 0.000000e+00 : f32
    %44 = vector.broadcast %cst_21 : f32 to vector<16x128xf32>
    %45 = arith.maximumf %43, %44 : vector<16x128xf32>
    %cst_22 = arith.constant 0.000000e+00 : f32
    %46 = vector.broadcast %cst_22 : f32 to vector<16x128xf32>
    %47 = arith.subf %46, %45 : vector<16x128xf32>
    %48 = vector.extract_strided_slice %2 {offsets = [0, 640], sizes = [16, 128], strides = [1, 1]} : vector<16x1280xf32> to vector<16x128xf32>
    %cst_23 = arith.constant 2.000000e+00 : f32
    %49 = vector.broadcast %cst_23 : f32 to vector<16x128xf32>
    %50 = arith.mulf %49, %48 : vector<16x128xf32>
    %cst_24 = arith.constant 2.000000e+00 : f32
    %51 = vector.broadcast %cst_24 : f32 to vector<16x128xf32>
    %52 = arith.subf %51, %50 : vector<16x128xf32>
    %cst_25 = arith.constant 0.000000e+00 : f32
    %53 = vector.broadcast %cst_25 : f32 to vector<16x128xf32>
    %54 = arith.maximumf %52, %53 : vector<16x128xf32>
    %cst_26 = arith.constant 0.000000e+00 : f32
    %55 = vector.broadcast %cst_26 : f32 to vector<16x128xf32>
    %56 = arith.subf %55, %54 : vector<16x128xf32>
    %57 = vector.extract_strided_slice %2 {offsets = [0, 768], sizes = [16, 128], strides = [1, 1]} : vector<16x1280xf32> to vector<16x128xf32>
    %cst_27 = arith.constant 2.000000e+00 : f32
    %58 = vector.broadcast %cst_27 : f32 to vector<16x128xf32>
    %59 = arith.mulf %58, %57 : vector<16x128xf32>
    %cst_28 = arith.constant 2.000000e+00 : f32
    %60 = vector.broadcast %cst_28 : f32 to vector<16x128xf32>
    %61 = arith.subf %60, %59 : vector<16x128xf32>
    %cst_29 = arith.constant 0.000000e+00 : f32
    %62 = vector.broadcast %cst_29 : f32 to vector<16x128xf32>
    %63 = arith.maximumf %61, %62 : vector<16x128xf32>
    %cst_30 = arith.constant 0.000000e+00 : f32
    %64 = vector.broadcast %cst_30 : f32 to vector<16x128xf32>
    %65 = arith.subf %64, %63 : vector<16x128xf32>
    %66 = vector.extract_strided_slice %2 {offsets = [0, 896], sizes = [16, 128], strides = [1, 1]} : vector<16x1280xf32> to vector<16x128xf32>
    %cst_31 = arith.constant 2.000000e+00 : f32
    %67 = vector.broadcast %cst_31 : f32 to vector<16x128xf32>
    %68 = arith.mulf %67, %66 : vector<16x128xf32>
    %cst_32 = arith.constant 2.000000e+00 : f32
    %69 = vector.broadcast %cst_32 : f32 to vector<16x128xf32>
    %70 = arith.subf %69, %68 : vector<16x128xf32>
    %cst_33 = arith.constant 0.000000e+00 : f32
    %71 = vector.broadcast %cst_33 : f32 to vector<16x128xf32>
    %72 = arith.maximumf %70, %71 : vector<16x128xf32>
    %cst_34 = arith.constant 0.000000e+00 : f32
    %73 = vector.broadcast %cst_34 : f32 to vector<16x128xf32>
    %74 = arith.subf %73, %72 : vector<16x128xf32>
    %75 = vector.extract_strided_slice %2 {offsets = [0, 1024], sizes = [16, 128], strides = [1, 1]} : vector<16x1280xf32> to vector<16x128xf32>
    %cst_35 = arith.constant 2.000000e+00 : f32
    %76 = vector.broadcast %cst_35 : f32 to vector<16x128xf32>
    %77 = arith.mulf %76, %75 : vector<16x128xf32>
    %cst_36 = arith.constant 2.000000e+00 : f32
    %78 = vector.broadcast %cst_36 : f32 to vector<16x128xf32>
    %79 = arith.subf %78, %77 : vector<16x128xf32>
    %cst_37 = arith.constant 0.000000e+00 : f32
    %80 = vector.broadcast %cst_37 : f32 to vector<16x128xf32>
    %81 = arith.maximumf %79, %80 : vector<16x128xf32>
    %cst_38 = arith.constant 0.000000e+00 : f32
    %82 = vector.broadcast %cst_38 : f32 to vector<16x128xf32>
    %83 = arith.subf %82, %81 : vector<16x128xf32>
    %84 = vector.extract_strided_slice %2 {offsets = [0, 1152], sizes = [16, 128], strides = [1, 1]} : vector<16x1280xf32> to vector<16x128xf32>
    %cst_39 = arith.constant 2.000000e+00 : f32
    %85 = vector.broadcast %cst_39 : f32 to vector<16x128xf32>
    %86 = arith.mulf %85, %84 : vector<16x128xf32>
    %cst_40 = arith.constant 2.000000e+00 : f32
    %87 = vector.broadcast %cst_40 : f32 to vector<16x128xf32>
    %88 = arith.subf %87, %86 : vector<16x128xf32>
    %cst_41 = arith.constant 0.000000e+00 : f32
    %89 = vector.broadcast %cst_41 : f32 to vector<16x128xf32>
    %90 = arith.maximumf %88, %89 : vector<16x128xf32>
    %cst_42 = arith.constant 0.000000e+00 : f32
    %91 = vector.broadcast %cst_42 : f32 to vector<16x128xf32>
    %92 = arith.subf %91, %90 : vector<16x128xf32>
    %93 = arith.maximumf %11, %20 : vector<16x128xf32>
    %94 = arith.maximumf %93, %29 : vector<16x128xf32>
    %95 = arith.maximumf %94, %38 : vector<16x128xf32>
    %96 = arith.maximumf %95, %47 : vector<16x128xf32>
    %97 = arith.maximumf %96, %56 : vector<16x128xf32>
    %98 = arith.maximumf %97, %65 : vector<16x128xf32>
    %99 = arith.maximumf %98, %74 : vector<16x128xf32>
    %100 = arith.maximumf %99, %83 : vector<16x128xf32>
    %101 = arith.maximumf %100, %92 : vector<16x128xf32>
    %cst_43 = arith.constant 0.000000e+00 : f32
    %102 = vector.broadcast %cst_43 : f32 to vector<16x128xf32>
    %cst_44 = arith.constant 0.000000e+00 : f32
    %103 = vector.broadcast %cst_44 : f32 to vector<16x128xf32>
    %104 = arith.subf %11, %101 : vector<16x128xf32>
    %105 = math.exp %104 : vector<16x128xf32>
    %106 = arith.mulf %11, %105 : vector<16x128xf32>
    %107 = arith.addf %102, %106 : vector<16x128xf32>
    %108 = arith.addf %103, %105 : vector<16x128xf32>
    %109 = arith.subf %20, %101 : vector<16x128xf32>
    %110 = math.exp %109 : vector<16x128xf32>
    %111 = arith.mulf %20, %110 : vector<16x128xf32>
    %112 = arith.addf %107, %111 : vector<16x128xf32>
    %113 = arith.addf %108, %110 : vector<16x128xf32>
    %114 = arith.subf %29, %101 : vector<16x128xf32>
    %115 = math.exp %114 : vector<16x128xf32>
    %116 = arith.mulf %29, %115 : vector<16x128xf32>
    %117 = arith.addf %112, %116 : vector<16x128xf32>
    %118 = arith.addf %113, %115 : vector<16x128xf32>
    %119 = arith.subf %38, %101 : vector<16x128xf32>
    %120 = math.exp %119 : vector<16x128xf32>
    %121 = arith.mulf %38, %120 : vector<16x128xf32>
    %122 = arith.addf %117, %121 : vector<16x128xf32>
    %123 = arith.addf %118, %120 : vector<16x128xf32>
    %124 = arith.subf %47, %101 : vector<16x128xf32>
    %125 = math.exp %124 : vector<16x128xf32>
    %126 = arith.mulf %47, %125 : vector<16x128xf32>
    %127 = arith.addf %122, %126 : vector<16x128xf32>
    %128 = arith.addf %123, %125 : vector<16x128xf32>
    %129 = arith.subf %56, %101 : vector<16x128xf32>
    %130 = math.exp %129 : vector<16x128xf32>
    %131 = arith.mulf %56, %130 : vector<16x128xf32>
    %132 = arith.addf %127, %131 : vector<16x128xf32>
    %133 = arith.addf %128, %130 : vector<16x128xf32>
    %134 = arith.subf %65, %101 : vector<16x128xf32>
    %135 = math.exp %134 : vector<16x128xf32>
    %136 = arith.mulf %65, %135 : vector<16x128xf32>
    %137 = arith.addf %132, %136 : vector<16x128xf32>
    %138 = arith.addf %133, %135 : vector<16x128xf32>
    %139 = arith.subf %74, %101 : vector<16x128xf32>
    %140 = math.exp %139 : vector<16x128xf32>
    %141 = arith.mulf %74, %140 : vector<16x128xf32>
    %142 = arith.addf %137, %141 : vector<16x128xf32>
    %143 = arith.addf %138, %140 : vector<16x128xf32>
    %144 = arith.subf %83, %101 : vector<16x128xf32>
    %145 = math.exp %144 : vector<16x128xf32>
    %146 = arith.mulf %83, %145 : vector<16x128xf32>
    %147 = arith.addf %142, %146 : vector<16x128xf32>
    %148 = arith.addf %143, %145 : vector<16x128xf32>
    %149 = arith.subf %92, %101 : vector<16x128xf32>
    %150 = math.exp %149 : vector<16x128xf32>
    %151 = arith.mulf %92, %150 : vector<16x128xf32>
    %152 = arith.addf %147, %151 : vector<16x128xf32>
    %153 = arith.addf %148, %150 : vector<16x128xf32>
    %154 = tpu.reciprocal %153 {approx = true} : vector<16x128xf32> -> vector<16x128xf32>
    %155 = arith.mulf %152, %154 : vector<16x128xf32>
    %c0_45 = arith.constant 0 : index
    %c0_46 = arith.constant 0 : index
    %156 = vector.load %arg4[%c0_45, %c0_46] : memref<16x128xf32, #tpu.memory_space<vmem>>, vector<16x128xf32>
    tpu.vector_store %arg4[%c0_45, %c0_46], %155 {strides = array<i32>} : memref<16x128xf32, #tpu.memory_space<vmem>>, vector<16x128xf32>,
    return
  }
  func.func @transform_0(%arg0: i32, %arg1: i32) -> (i32, i32) {
    %c0_i32 = arith.constant 0 : i32
    %c0_i32_0 = arith.constant 0 : i32
    return %arg1, %c0_i32 : i32, i32
  }
  func.func @transform_1(%arg0: i32, %arg1: i32) -> (i32, i32) {
    %c0_i32 = arith.constant 0 : i32
    %c0_i32_0 = arith.constant 0 : i32
    return %c0_i32, %arg0 : i32, i32
  }
  func.func @transform_2(%arg0: i32, %arg1: i32) -> (i32, i32) {
    %c0_i32 = arith.constant 0 : i32
    return %arg1, %arg0 : i32, i32
  }
}

</mosaic_0001>

<bundles_post_ra>
// kernel: tpu_custom_call.1
= control target key start
LH: loop header
LB: loop body
LE: loop exit
PB: predicated region body
PF: predicated region fallthrough
CT: control target
= control target key end

     0   :  { %7 = vsyncpa [#allocation3], 0  ;;  %s1487_s0 = inlined_call_operand.hbm [shape: bf16[16,128], index: 0, kind: input, shape index: {}]   ;;  %s1488_s1 = inlined_call_operand.hbm [shape: bf16[128,1280], index: 1, kind: input, shape index: {}]   ;;  %s1489_s2 = inlined_call_operand.hbm [shape: f32[16,128], index: 2, kind: output, shape index: {}]  }
   0x1   :  { %8 = vsyncpa [#allocation6], 0 }
   0x2   :  { %9 = vsyncpa [#allocation4], 0  ;;  %s1314_s9 = smov [#allocation2]   ;;  %s1242_s13 = scalar_lea.hbm %s1487_s0, 128 }
   0x3   :  { %s15_s10 = sshll.u32 %s1314_s9, 4  ;;  %p1243_p0 = scmp.ne.s32.totalorder %s1487_s0, %s1242_s13  ;;  %s16_s10 = int_to_ptr.vmem [resolvable:$true] %s15_s10 }
   0x4   :  { %p1246_p1 = scmp.lt.u32.totalorder %s1242_s13, %s1487_s0 }
   0x6   :  { %p1248_p2 = pnand %p1246_p1, %p1243_p0 }
   0x8   :  { %1251 = shalt.err (!%p1248_p2)
}
   0x9   :  { %s1252_s18 = scalar_lea.vmem %s16_s10, 128  ;;  %p1257_p4 = scmp.lt.s32.totalorder %s16_s10, %s16_s10 }
   0xa   :  { %p1253_p3 = scmp.ne.s32.totalorder %s16_s10, %s1252_s18  ;;  %p1258_p5 = scmp.lt.s32.totalorder %s1252_s18, %s1252_s18 }
   0xc   :  { %p1259_p6 = por %p1258_p5, %p1257_p4 }
   0xe   :  { %p1260_p7 = pnand %p1259_p6, %p1253_p3 }
  0x10   :  { %1263 = shalt.err (!%p1260_p7)
}
  0x11   :  { %s1315_s19 = smov 64   ;;  %s1316_s20 = smov 4  }
  0x12   :  { %21 = dma.hbm_to_vmem [thread:$0]  %s1487_s0, 128, %s16_s10, [#allocation3], %s1315_s19, %s1315_s19, %s1316_s20  }
  0x13   :  { %s1317_s23 = smov [#allocation5]   ;;  %s1264_s27 = scalar_lea.hbm %s1488_s1, 10240 }
  0x14   :  { %s27_s24 = sshll.u32 %s1317_s23, 4  ;;  %p1265_p8 = scmp.ne.s32.totalorder %s1488_s1, %s1264_s27  ;;  %s28_s24 = int_to_ptr.vmem [resolvable:$true] %s27_s24 }
  0x15   :  { %p1268_p9 = scmp.lt.u32.totalorder %s1264_s27, %s1488_s1 }
  0x17   :  { %p1270_p10 = pnand %p1268_p9, %p1265_p8 }
  0x19   :  { %1273 = shalt.err (!%p1270_p10)
}
  0x1a   :  { %s1274_s4 = scalar_lea.vmem %s28_s24, 10240  ;;  %p1279_p12 = scmp.lt.s32.totalorder %s28_s24, %s28_s24 }
  0x1b   :  { %p1275_p11 = scmp.ne.s32.totalorder %s28_s24, %s1274_s4  ;;  %p1280_p13 = scmp.lt.s32.totalorder %s1274_s4, %s1274_s4 }
  0x1d   :  { %p1281_p0 = por %p1280_p13, %p1279_p12 }
  0x1f   :  { %p1282_p1 = pnand %p1281_p0, %p1275_p11 }
  0x21   :  { %1285 = shalt.err (!%p1282_p1)
}
  0x22   :  { %s1318_s0 = smov 640   ;;  %s1319_s5 = smov 40  }
  0x23   :  { %33 = dma.hbm_to_vmem [thread:$0]  %s1488_s1, 10240, %s28_s24, [#allocation6], %s1318_s0, %s1318_s0, %s1319_s5  }
  0x24   :  { %1308 = dma.done.wait [#allocation3], 128  }
  0x25   :  { %1309 = vsyncadd [#allocation3], 4294967168 }
  0x26   :  { %1310 = dma.done.wait [#allocation6], 10240  }
  0x27   :  { %1311 = vsyncadd [#allocation6], 4294957056  ;;  %v1320_v0 = vmov 0   ;;  %v1077_v1 = vld [vmem:[#allocation5 + $0x4] ss:$40 sps:$4 sm:$0xff]   ;;  %v1365_v32 = vld [vmem:[#allocation2] sm:$0xff]  }
  0x28   :  { %561 = vmatprep.mubr.bf16.mxu0 %v1320_v0  ;;  %604 = vmatprep.mubr.bf16.mxu1 %v1320_v0  ;;  %v1079_v2 = vld [vmem:[#allocation5] ss:$40 sps:$4 sm:$0xff]   ;;  %v1080_v3 = vld [vmem:[#allocation5 + $0xc] ss:$40 sps:$4 sm:$0xff]   ;;  %v1085_v6 = vld [vmem:[#allocation5 + $0x50] ss:$40 sps:$4 sm:$0xff]  }
  0x29   :  { %529 = vmatprep.subr.bf16.mxu0 %v1077_v1  ;;  %v1082_v4 = vld [vmem:[#allocation5 + $0x54] ss:$40 sps:$4 sm:$0xff]   ;;  %v1084_v5 = vld [vmem:[#allocation5 + $0x8] ss:$40 sps:$4 sm:$0xff]   ;;  %572 = vmatprep.subr.bf16.mxu1 %v1080_v3  ;;  %v1088_v8 = vld [vmem:[#allocation5 + $0xa4] ss:$40 sps:$4 sm:$0xff]  }
  0x2a   :  { %530 = vmatpush1.bf16.msra.mxu0 %v1079_v2  ;;  %v1086_v7 = vld [vmem:[#allocation5 + $0x5c] ss:$40 sps:$4 sm:$0xff]   ;;  %573 = vmatpush1.bf16.msra.mxu1 %v1084_v5  ;;  %v1090_v9 = vld [vmem:[#allocation5 + $0x58] ss:$40 sps:$4 sm:$0xff]   ;;  %v1092_v11 = vld [vmem:[#allocation5 + $0xac] ss:$40 sps:$4 sm:$0xff]  }
  0x2b   :  { %531 = vmatprep.subr.bf16.mxu0 %v1082_v4  ;;  %574 = vmatprep.subr.bf16.mxu1 %v1086_v7  ;;  %v1091_v10 = vld [vmem:[#allocation5 + $0xa0] ss:$40 sps:$4 sm:$0xff]   ;;  %v1094_v12 = vld [vmem:[#allocation5 + $0xf4] ss:$40 sps:$4 sm:$0xff]   ;;  %v1097_v15 = vld [vmem:[#allocation5 + $0xf0] ss:$40 sps:$4 sm:$0xff]  }
  0x2c   :  { %v1096_v13 = vld [vmem:[#allocation5 + $0xa8] ss:$40 sps:$4 sm:$0xff]   ;;  %v1098_v14 = vld [vmem:[#allocation5 + $0xfc] ss:$40 sps:$4 sm:$0xff]   ;;  %v1102_v17 = vld [vmem:[#allocation5 + $0xf8] ss:$40 sps:$4 sm:$0xff]  }
  0x2d   :  { %v1100_v16 = vld [vmem:[#allocation5 + $0x144] ss:$40 sps:$4 sm:$0xff]   ;;  %v1103_v19 = vld [vmem:[#allocation5 + $0x140] ss:$40 sps:$4 sm:$0xff]   ;;  %v1106_v20 = vld [vmem:[#allocation5 + $0x194] ss:$40 sps:$4 sm:$0xff]  }
  0x2e   :  { %532 = vmatpush1.bf16.msra.mxu0 %v1085_v6  ;;  %575 = vmatpush1.bf16.msra.mxu1 %v1090_v9  ;;  %v1104_v18 = vld [vmem:[#allocation5 + $0x14c] ss:$40 sps:$4 sm:$0xff]   ;;  %v1108_v21 = vld [vmem:[#allocation5 + $0x148] ss:$40 sps:$4 sm:$0xff]   ;;  %v1110_v22 = vld [vmem:[#allocation5 + $0x19c] ss:$40 sps:$4 sm:$0xff]  }
  0x2f   :  { %533 = vmatprep.subr.bf16.mxu0 %v1088_v8  ;;  %576 = vmatprep.subr.bf16.mxu1 %v1092_v11  ;;  %v1109_v23 = vld [vmem:[#allocation5 + $0x190] ss:$40 sps:$4 sm:$0xff]   ;;  %v1112_v24 = vld [vmem:[#allocation5 + $0x1e4] ss:$40 sps:$4 sm:$0xff]   ;;  %v1115_v27 = vld [vmem:[#allocation5 + $0x1e0] ss:$40 sps:$4 sm:$0xff]  }
  0x30   :  { %v1114_v25 = vld [vmem:[#allocation5 + $0x198] ss:$40 sps:$4 sm:$0xff]   ;;  %v1116_v26 = vld [vmem:[#allocation5 + $0x1ec] ss:$40 sps:$4 sm:$0xff]   ;;  %v1120_v29 = vld [vmem:[#allocation5 + $0x1e8] ss:$40 sps:$4 sm:$0xff]  }
  0x31   :  { %v1118_v28 = vld [vmem:[#allocation5 + $0x234] ss:$40 sps:$4 sm:$0xff]   ;;  %v1121_v31 = vld [vmem:[#allocation5 + $0x230] ss:$40 sps:$4 sm:$0xff]   ;;  %v1131_v37 = vld [vmem:[#allocation5 + $0x64] ss:$40 sps:$4 sm:$0xff]  }
  0x32   :  { %534 = vmatpush1.bf16.msra.mxu0 %v1091_v10  ;;  %577 = vmatpush1.bf16.msra.mxu1 %v1096_v13  ;;  %v1122_v30 = vld [vmem:[#allocation5 + $0x23c] ss:$40 sps:$4 sm:$0xff]   ;;  %v1125_v34 = vld [vmem:[#allocation5 + $0x238] ss:$40 sps:$4 sm:$0xff]   ;;  %v1140_v39 = vld [vmem:[#allocation5 + $0x6c] ss:$40 sps:$4 sm:$0xff]  }
  0x33   :  { %535 = vmatprep.subr.bf16.mxu0 %v1094_v12  ;;  %578 = vmatprep.subr.bf16.mxu1 %v1098_v14  ;;  %v1128_v33 = vld [vmem:[#allocation5 + $0x14] ss:$40 sps:$4 sm:$0xff]   ;;  %v1126_v36 = vld [vmem:[#allocation5 + $0x10] ss:$40 sps:$4 sm:$0xff]   ;;  %v1129_v40 = vld [vmem:[#allocation5 + $0x60] ss:$40 sps:$4 sm:$0xff]  }
  0x34   :  { %v1134_v35 = vld [vmem:[#allocation5 + $0x1c] ss:$40 sps:$4 sm:$0xff]   ;;  %v1132_v38 = vld [vmem:[#allocation5 + $0x18] ss:$40 sps:$4 sm:$0xff]   ;;  %v1138_v42 = vld [vmem:[#allocation5 + $0x68] ss:$40 sps:$4 sm:$0xff]  }
  0x35   :  { %v1137_v41 = vld [vmem:[#allocation5 + $0xb4] ss:$40 sps:$4 sm:$0xff]   ;;  %v1135_v44 = vld [vmem:[#allocation5 + $0xb0] ss:$40 sps:$4 sm:$0xff]   ;;  %v1143_v45 = vld [vmem:[#allocation5 + $0x104] ss:$40 sps:$4 sm:$0xff]  }
  0x36   :  { %536 = vmatpush1.bf16.msra.mxu0 %v1097_v15  ;;  %579 = vmatpush1.bf16.msra.mxu1 %v1102_v17  ;;  %v1146_v43 = vld [vmem:[#allocation5 + $0xbc] ss:$40 sps:$4 sm:$0xff]   ;;  %v1144_v46 = vld [vmem:[#allocation5 + $0xb8] ss:$40 sps:$4 sm:$0xff]   ;;  %v1152_v47 = vld [vmem:[#allocation5 + $0x10c] ss:$40 sps:$4 sm:$0xff]  }
  0x37   :  { %537 = vmatprep.subr.bf16.mxu0 %v1100_v16  ;;  %580 = vmatprep.subr.bf16.mxu1 %v1104_v18  ;;  %v1141_v48 = vld [vmem:[#allocation5 + $0x100] ss:$40 sps:$4 sm:$0xff]   ;;  %v1149_v49 = vld [vmem:[#allocation5 + $0x154] ss:$40 sps:$4 sm:$0xff]   ;;  %v1147_v52 = vld [vmem:[#allocation5 + $0x150] ss:$40 sps:$4 sm:$0xff]  }
  0x38   :  { %v1150_v50 = vld [vmem:[#allocation5 + $0x108] ss:$40 sps:$4 sm:$0xff]   ;;  %v1158_v51 = vld [vmem:[#allocation5 + $0x15c] ss:$40 sps:$4 sm:$0xff]   ;;  %v1156_v54 = vld [vmem:[#allocation5 + $0x158] ss:$40 sps:$4 sm:$0xff]  }
  0x39   :  { %v1155_v53 = vld [vmem:[#allocation5 + $0x1a4] ss:$40 sps:$4 sm:$0xff]   ;;  %v1153_v56 = vld [vmem:[#allocation5 + $0x1a0] ss:$40 sps:$4 sm:$0xff]   ;;  %v1161_v57 = vld [vmem:[#allocation5 + $0x1f4] ss:$40 sps:$4 sm:$0xff]  }
  0x3a   :  { %538 = vmatpush1.bf16.msra.mxu0 %v1103_v19  ;;  %581 = vmatpush1.bf16.msra.mxu1 %v1108_v21  ;;  %v1164_v55 = vld [vmem:[#allocation5 + $0x1ac] ss:$40 sps:$4 sm:$0xff]   ;;  %v1162_v58 = vld [vmem:[#allocation5 + $0x1a8] ss:$40 sps:$4 sm:$0xff]   ;;  %v1170_v59 = vld [vmem:[#allocation5 + $0x1fc] ss:$40 sps:$4 sm:$0xff]  }
  0x3b   :  { %539 = vmatprep.subr.bf16.mxu0 %v1106_v20  ;;  %582 = vmatprep.subr.bf16.mxu1 %v1110_v22  ;;  %v1159_v60 = vld [vmem:[#allocation5 + $0x1f0] ss:$40 sps:$4 sm:$0xff]   ;;  %v1167_v61 = vld [vmem:[#allocation5 + $0x244] ss:$40 sps:$4 sm:$0xff]   ;;  %v1165_v1 = vld [vmem:[#allocation5 + $0x240] ss:$40 sps:$4 sm:$0xff]  }
  0x3c   :  { %v1168_v62 = vld [vmem:[#allocation5 + $0x1f8] ss:$40 sps:$4 sm:$0xff]   ;;  %v1173_v63 = vld [vmem:[#allocation5 + $0x24c] ss:$40 sps:$4 sm:$0xff]   ;;  %v1171_v3 = vld [vmem:[#allocation5 + $0x248] ss:$40 sps:$4 sm:$0xff]  }
  0x3d   :  { %v1176_v2 = vld [vmem:[#allocation5 + $0x24] ss:$40 sps:$4 sm:$0xff]   ;;  %v1174_v4 = vld [vmem:[#allocation5 + $0x20] ss:$40 sps:$4 sm:$0xff]   ;;  %v1179_v5 = vld [vmem:[#allocation5 + $0x74] ss:$40 sps:$4 sm:$0xff]  }
  0x3e   :  { %540 = vmatpush1.bf16.msra.mxu0 %v1109_v23  ;;  %583 = vmatpush1.bf16.msra.mxu1 %v1114_v25  ;;  %v1177_v6 = vld [vmem:[#allocation5 + $0x70] ss:$40 sps:$4 sm:$0xff]   ;;  %v1182_v7 = vld [vmem:[#allocation5 + $0xc4] ss:$40 sps:$4 sm:$0xff]   ;;  %v1180_v8 = vld [vmem:[#allocation5 + $0xc0] ss:$40 sps:$4 sm:$0xff]  }
  0x3f   :  { %541 = vmatprep.subr.bf16.mxu0 %v1112_v24  ;;  %584 = vmatprep.subr.bf16.mxu1 %v1116_v26  ;;  %v1185_v9 = vld [vmem:[#allocation5 + $0x114] ss:$40 sps:$4 sm:$0xff]   ;;  %v1183_v10 = vld [vmem:[#allocation5 + $0x110] ss:$40 sps:$4 sm:$0xff]   ;;  %v1188_v11 = vld [vmem:[#allocation5 + $0x164] ss:$40 sps:$4 sm:$0xff]  }
  0x40   :  { %v1186_v12 = vld [vmem:[#allocation5 + $0x160] ss:$40 sps:$4 sm:$0xff]   ;;  %v1191_v13 = vld [vmem:[#allocation5 + $0x1b4] ss:$40 sps:$4 sm:$0xff]   ;;  %v1189_v14 = vld [vmem:[#allocation5 + $0x1b0] ss:$40 sps:$4 sm:$0xff]  }
  0x41   :  { %v1192_v15 = vld [vmem:[#allocation5 + $0x200] ss:$40 sps:$4 sm:$0xff]   ;;  %v1197_v16 = vld [vmem:[#allocation5 + $0x254] ss:$40 sps:$4 sm:$0xff]   ;;  %v1195_v17 = vld [vmem:[#allocation5 + $0x250] ss:$40 sps:$4 sm:$0xff]  }
  0x42   :  { %542 = vmatpush1.bf16.msra.mxu0 %v1115_v27  ;;  %585 = vmatpush1.bf16.msra.mxu1 %v1120_v29  ;;  %s1321_s1 = smov [#allocation7]  }
  0x43   :  { %543 = vmatprep.subr.bf16.mxu0 %v1118_v28  ;;  %586 = vmatprep.subr.bf16.mxu1 %v1122_v30  ;;  %s973_s8 = sshll.u32 %s1321_s1, 4  ;;  %s974_s8 = int_to_ptr.vmem [resolvable:$true] %s973_s8 }
  0x44   :  { %s1286_s9 = scalar_lea.vmem %s974_s8, 256  ;;  %p1291_p3 = scmp.lt.s32.totalorder %s974_s8, %s974_s8 }
  0x45   :  { %p1287_p2 = scmp.ne.s32.totalorder %s974_s8, %s1286_s9  ;;  %p1292_p4 = scmp.lt.s32.totalorder %s1286_s9, %s1286_s9 }
  0x46   :  { %544 = vmatpush1.bf16.msra.mxu0 %v1121_v31  ;;  %587 = vmatpush1.bf16.msra.mxu1 %v1125_v34 }
  0x47   :  { %615 = vmatprep.subr.bf16.mxu0 %v1128_v33  ;;  %658 = vmatprep.subr.bf16.mxu1 %v1134_v35  ;;  %p1293_p5 = por %p1292_p4, %p1291_p3 }
  0x49   :  { %562 = vmatmul.mubr.bf16.vlgmr.msra.gmra.mrb[0].mxu0 %v1365_v32  ;;  %605 = vmatmul.mubr.bf16.vlgmr.msra.gmra.mrb[0].mxu1 %v1365_v32  ;;  %p1294_p6 = pnand %p1293_p5, %p1287_p2 }
  0x4a   :  { %616 = vmatpush1.bf16.msra.mxu0 %v1126_v36  ;;  %647 = vmatprep.mubr.bf16.mxu0 %v1320_v0 }
  0x4b   :  { %617 = vmatprep.subr.bf16.mxu0 %v1131_v37  ;;  %659 = vmatpush1.bf16.msra.mxu1 %v1132_v38 }
  0x4c   :  { %690 = vmatprep.mubr.bf16.mxu1 %v1320_v0  ;;  %660 = vmatprep.subr.bf16.mxu1 %v1140_v39 }
  0x4e   :  { %618 = vmatpush1.bf16.msra.mxu0 %v1129_v40 }
  0x4f   :  { %619 = vmatprep.subr.bf16.mxu0 %v1137_v41  ;;  %661 = vmatpush1.bf16.msra.mxu1 %v1138_v42 }
  0x50   :  { %662 = vmatprep.subr.bf16.mxu1 %v1146_v43 }
  0x52   :  { %620 = vmatpush1.bf16.msra.mxu0 %v1135_v44 }
  0x53   :  { %621 = vmatprep.subr.bf16.mxu0 %v1143_v45  ;;  %663 = vmatpush1.bf16.msra.mxu1 %v1144_v46 }
  0x54   :  { %664 = vmatprep.subr.bf16.mxu1 %v1152_v47 }
  0x56   :  { %622 = vmatpush1.bf16.msra.mxu0 %v1141_v48 }
  0x57   :  { %623 = vmatprep.subr.bf16.mxu0 %v1149_v49  ;;  %665 = vmatpush1.bf16.msra.mxu1 %v1150_v50 }
  0x58   :  { %666 = vmatprep.subr.bf16.mxu1 %v1158_v51 }
  0x5a   :  { %624 = vmatpush1.bf16.msra.mxu0 %v1147_v52 }
  0x5b   :  { %625 = vmatprep.subr.bf16.mxu0 %v1155_v53  ;;  %667 = vmatpush1.bf16.msra.mxu1 %v1156_v54 }
  0x5c   :  { %668 = vmatprep.subr.bf16.mxu1 %v1164_v55 }
  0x5e   :  { %626 = vmatpush1.bf16.msra.mxu0 %v1153_v56 }
  0x5f   :  { %627 = vmatprep.subr.bf16.mxu0 %v1161_v57  ;;  %669 = vmatpush1.bf16.msra.mxu1 %v1162_v58 }
  0x60   :  { %670 = vmatprep.subr.bf16.mxu1 %v1170_v59 }
  0x62   :  { %628 = vmatpush1.bf16.msra.mxu0 %v1159_v60 }
  0x63   :  { %629 = vmatprep.subr.bf16.mxu0 %v1167_v61  ;;  %671 = vmatpush1.bf16.msra.mxu1 %v1168_v62 }
  0x64   :  { %672 = vmatprep.subr.bf16.mxu1 %v1173_v63 }
  0x66   :  { %630 = vmatpush1.bf16.msra.mxu0 %v1165_v1 }
  0x67   :  { %701 = vmatprep.subr.bf16.mxu0 %v1176_v2  ;;  %673 = vmatpush1.bf16.msra.mxu1 %v1171_v3 }
  0x69   :  { %648 = vmatmul.mubr.bf16.vlgmr.msra.gmra.mrb[4].mxu0 %v1365_v32 }
  0x6a   :  { %702 = vmatpush1.bf16.msra.mxu0 %v1174_v4  ;;  %733 = vmatprep.mubr.bf16.mxu0 %v1320_v0  ;;  %v1194_v0 = vld [vmem:[#allocation5 + $0x204] ss:$40 sps:$4 sm:$0xff]  }
  0x6b   :  { %691 = vmatmul.mubr.bf16.vlgmr.msra.gmra.mrb[4].mxu1 %v1365_v32  ;;  %703 = vmatprep.subr.bf16.mxu0 %v1179_v5 }
  0x6e   :  { %704 = vmatpush1.bf16.msra.mxu0 %v1177_v6 }
  0x6f   :  { %705 = vmatprep.subr.bf16.mxu0 %v1182_v7 }
  0x72   :  { %706 = vmatpush1.bf16.msra.mxu0 %v1180_v8 }
  0x73   :  { %707 = vmatprep.subr.bf16.mxu0 %v1185_v9 }
  0x76   :  { %708 = vmatpush1.bf16.msra.mxu0 %v1183_v10 }
  0x77   :  { %709 = vmatprep.subr.bf16.mxu0 %v1188_v11 }
  0x7a   :  { %710 = vmatpush1.bf16.msra.mxu0 %v1186_v12 }
  0x7b   :  { %711 = vmatprep.subr.bf16.mxu0 %v1191_v13 }
  0x7e   :  { %712 = vmatpush1.bf16.msra.mxu0 %v1189_v14 }
  0x7f   :  { %713 = vmatprep.subr.bf16.mxu0 %v1194_v0 }
  0x82   :  { %714 = vmatpush1.bf16.msra.mxu0 %v1192_v15 }
  0x83   :  { %715 = vmatprep.subr.bf16.mxu0 %v1197_v16 }
  0x86   :  { %716 = vmatpush1.bf16.msra.mxu0 %v1195_v17 }
  0x89   :  { %734 = vmatmul.mubr.bf16.vlgmr.msra.gmra.mrb[8].mxu0 %v1365_v32 }
 0x11c   :  { %v563_v18 = vpop.f32.mrb[0].mxu0  ;;  %v606_v23 = vpop.f32.mrb[0].mxu1 }
 0x11d   :  { %v744_v19 = vmul.f32 2.0, %v563_v18  ;;  %v565_v20 = vpop.f32.mrb[1].mxu0  ;;  %v760_v27 = vmul.f32 2.0, %v606_v23  ;;  %v608_v28 = vpop.f32.mrb[1].mxu1 }
 0x11e   :  { %v752_v21 = vmul.f32 2.0, %v565_v20  ;;  %v567_v22 = vpop.f32.mrb[2].mxu0  ;;  %v768_v31 = vmul.f32 2.0, %v608_v28  ;;  %v610_v33 = vpop.f32.mrb[2].mxu1 }
 0x11f   :  { %v746_v24 = vsub.f32 2.0, %v744_v19  ;;  %v745_v25 = vmul.f32 2.0, %v567_v22  ;;  %v569_v26 = vpop.f32.mrb[3].mxu0  ;;  %v762_v36 = vsub.f32 2.0, %v760_v27  ;;  %v761_v37 = vmul.f32 2.0, %v610_v33  ;;  %v612_v32 = vpop.f32.mrb[3].mxu1 }
 0x120   :  { %v754_v29 = vsub.f32 2.0, %v752_v21  ;;  %v753_v30 = vmul.f32 2.0, %v569_v26  ;;  %v770_v40 = vsub.f32 2.0, %v768_v31  ;;  %v769_v41 = vmul.f32 2.0, %v612_v32 }
 0x121   :  { %v748_v34 = vmax.f32 %v746_v24, 0.0  ;;  %v747_v35 = vsub.f32 2.0, %v745_v25  ;;  %v764_v44 = vmax.f32 %v762_v36, 0.0  ;;  %v763_v45 = vsub.f32 2.0, %v761_v37 }
 0x122   :  { %v756_v38 = vmax.f32 %v754_v29, 0.0  ;;  %v755_v39 = vsub.f32 2.0, %v753_v30  ;;  %v772_v48 = vmax.f32 %v770_v40, 0.0  ;;  %v771_v49 = vsub.f32 2.0, %v769_v41 }
 0x123   :  { %v1375_v42 = vsub.f32 0.0, %v748_v34  ;;  %v749_v43 = vmax.f32 %v747_v35, 0.0  ;;  %v1381_v51 = vsub.f32 0.0, %v764_v44  ;;  %v765_v52 = vmax.f32 %v763_v45, 0.0 }
 0x124   :  { %v1377_v46 = vsub.f32 0.0, %v756_v38  ;;  %v757_v47 = vmax.f32 %v755_v39, 0.0  ;;  %v1387_v55 = vsub.f32 0.0, %v772_v48  ;;  %v773_v56 = vmax.f32 %v771_v49, 0.0 }
 0x125   :  { %v1379_v50 = vsub.f32 0.0, %v749_v43  ;;  %v1389_v57 = vsub.f32 0.0, %v765_v52 }
 0x126   :  { %v824_v53 = vmax.f32 %v1375_v42, %v1377_v46  ;;  %v1385_v54 = vsub.f32 0.0, %v757_v47  ;;  %v1394_v60 = vsub.f32 0.0, %v773_v56 }
 0x128   :  { %v825_v58 = vmax.f32 %v1379_v50, %v1385_v54  ;;  %v826_v59 = vmax.f32 %v824_v53, %v1381_v51 }
 0x12a   :  { %v828_v61 = vmax.f32 %v826_v59, %v1387_v55  ;;  %v827_v62 = vmax.f32 %v825_v58, %v1389_v57 }
 0x12c   :  { %v829_v63 = vmax.f32 %v827_v62, %v1394_v60 }
 0x13c   :  { %v649_v1 = vpop.f32.mrb[4].mxu0 }
 0x13d   :  { %v776_v2 = vmul.f32 2.0, %v649_v1  ;;  %v651_v3 = vpop.f32.mrb[5].mxu0 }
 0x13e   :  { %v784_v4 = vmul.f32 2.0, %v651_v3  ;;  %v653_v5 = vpop.f32.mrb[6].mxu0  ;;  %v692_v6 = vpop.f32.mrb[4].mxu1 }
 0x13f   :  { %v778_v7 = vsub.f32 2.0, %v776_v2  ;;  %v777_v8 = vmul.f32 2.0, %v653_v5  ;;  %v655_v9 = vpop.f32.mrb[7].mxu0  ;;  %v792_v10 = vmul.f32 2.0, %v692_v6  ;;  %v694_v11 = vpop.f32.mrb[5].mxu1 }
 0x140   :  { %v786_v12 = vsub.f32 2.0, %v784_v4  ;;  %v785_v13 = vmul.f32 2.0, %v655_v9  ;;  %v800_v14 = vmul.f32 2.0, %v694_v11  ;;  %v696_v0 = vpop.f32.mrb[6].mxu1 }
 0x141   :  { %v780_v15 = vmax.f32 %v778_v7, 0.0  ;;  %v779_v16 = vsub.f32 2.0, %v777_v8  ;;  %v794_v17 = vsub.f32 2.0, %v792_v10  ;;  %v793_v18 = vmul.f32 2.0, %v696_v0  ;;  %v698_v19 = vpop.f32.mrb[7].mxu1 }
 0x142   :  { %v788_v20 = vmax.f32 %v786_v12, 0.0  ;;  %v787_v21 = vsub.f32 2.0, %v785_v13  ;;  %v802_v22 = vsub.f32 2.0, %v800_v14  ;;  %v801_v23 = vmul.f32 2.0, %v698_v19 }
 0x143   :  { %v1399_v24 = vsub.f32 0.0, %v780_v15  ;;  %v781_v25 = vmax.f32 %v779_v16, 0.0  ;;  %v796_v26 = vmax.f32 %v794_v17, 0.0  ;;  %v795_v27 = vsub.f32 2.0, %v793_v18 }
 0x144   :  { %v1401_v28 = vsub.f32 0.0, %v788_v20  ;;  %v789_v29 = vmax.f32 %v787_v21, 0.0  ;;  %v804_v30 = vmax.f32 %v802_v22, 0.0  ;;  %v803_v31 = vsub.f32 2.0, %v801_v23 }
 0x145   :  { %v830_v33 = vmax.f32 %v828_v61, %v1399_v24  ;;  %v1404_v34 = vsub.f32 0.0, %v781_v25  ;;  %v1406_v35 = vsub.f32 0.0, %v796_v26  ;;  %v797_v36 = vmax.f32 %v795_v27, 0.0 }
 0x146   :  { %v1408_v37 = vsub.f32 0.0, %v789_v29  ;;  %v805_v32 = vmax.f32 %v803_v31, 0.0  ;;  %v1412_v40 = vsub.f32 0.0, %v804_v30 }
 0x147   :  { %v832_v38 = vmax.f32 %v830_v33, %v1401_v28  ;;  %v831_v39 = vmax.f32 %v829_v63, %v1404_v34  ;;  %v1414_v41 = vsub.f32 0.0, %v797_v36 }
 0x148   :  { %v1418_v45 = vsub.f32 0.0, %v805_v32 }
 0x149   :  { %v833_v43 = vmax.f32 %v831_v39, %v1408_v37  ;;  %v834_v44 = vmax.f32 %v832_v38, %v1406_v35 }
 0x14b   :  { %v836_v47 = vmax.f32 %v834_v44, %v1412_v40  ;;  %v835_v48 = vmax.f32 %v833_v43, %v1414_v41 }
 0x14d   :  { %v837_v49 = vmax.f32 %v835_v48, %v1418_v45 }
 0x15c   :  { %v735_v52 = vpop.f32.mrb[8].mxu0 }
 0x15d   :  { %v808_v53 = vmul.f32 2.0, %v735_v52  ;;  %v737_v56 = vpop.f32.mrb[9].mxu0 }
 0x15e   :  { %v816_v58 = vmul.f32 2.0, %v737_v56  ;;  %v739_v59 = vpop.f32.mrb[10].mxu0 }
 0x15f   :  { %v810_v61 = vsub.f32 2.0, %v808_v53  ;;  %v809_v62 = vmul.f32 2.0, %v739_v59  ;;  %v741_v63 = vpop.f32.mrb[11].mxu0 }
 0x160   :  { %v818_v1 = vsub.f32 2.0, %v816_v58  ;;  %v817_v2 = vmul.f32 2.0, %v741_v63 }
 0x161   :  { %v812_v3 = vmax.f32 %v810_v61, 0.0  ;;  %v811_v4 = vsub.f32 2.0, %v809_v62 }
 0x162   :  { %v820_v5 = vmax.f32 %v818_v1, 0.0  ;;  %v819_v6 = vsub.f32 2.0, %v817_v2 }
 0x163   :  { %v1423_v7 = vsub.f32 0.0, %v812_v3  ;;  %v813_v8 = vmax.f32 %v811_v4, 0.0 }
 0x164   :  { %v1425_v9 = vsub.f32 0.0, %v820_v5  ;;  %v821_v10 = vmax.f32 %v819_v6, 0.0 }
 0x165   :  { %v838_v11 = vmax.f32 %v836_v47, %v1423_v7  ;;  %v1428_v12 = vsub.f32 0.0, %v813_v8 }
 0x166   :  { %v1432_v0 = vsub.f32 0.0, %v821_v10 }
 0x167   :  { %v840_v13 = vmax.f32 %v838_v11, %v1425_v9  ;;  %v839_v14 = vmax.f32 %v837_v49, %v1428_v12 }
 0x169   :  { %v842_v15 = vsub.f32 %v1375_v42, %v840_v13  ;;  %v854_v16 = vsub.f32 %v1377_v46, %v840_v13  ;;  %v866_v17 = vsub.f32 %v1381_v51, %v840_v13  ;;  %v878_v18 = vsub.f32 %v1387_v55, %v840_v13 }
 0x16a   :  { %v890_v19 = vsub.f32 %v1399_v24, %v840_v13  ;;  %v902_v20 = vsub.f32 %v1401_v28, %v840_v13  ;;  %v914_v21 = vsub.f32 %v1406_v35, %v840_v13  ;;  %v926_v22 = vsub.f32 %v1412_v40, %v840_v13 }
 0x16b   :  { %v844_v23 = vmul.f32 1.442695, %v842_v15  ;;  %v856_v25 = vmul.f32 1.442695, %v854_v16  ;;  %v868_v26 = vmul.f32 1.442695, %v866_v17  ;;  %v938_v27 = vsub.f32 %v1423_v7, %v840_v13 }
 0x16c   :  { %v880_v29 = vmul.f32 1.442695, %v878_v18  ;;  %v950_v30 = vsub.f32 %v1425_v9, %v840_v13  ;;  %v892_v31 = vmul.f32 1.442695, %v890_v19  ;;  %v904_v33 = vmul.f32 1.442695, %v902_v20 }
 0x16d   :  { %1198 = vpow2.f32 %v844_v23  ;;  %v841_v36 = vmax.f32 %v839_v14, %v1432_v0  ;;  %v916_v32 = vmul.f32 1.442695, %v914_v21  ;;  %v928_v38 = vmul.f32 1.442695, %v926_v22 }
 0x16e   :  { %1200 = vpow2.f32 %v856_v25  ;;  %v940_v39 = vmul.f32 1.442695, %v938_v27  ;;  %v952_v53 = vmul.f32 1.442695, %v950_v30 }
 0x16f   :  { %1202 = vpow2.f32 %v868_v26  ;;  %v843_v43 = vsub.f32 %v1379_v50, %v841_v36  ;;  %v855_v44 = vsub.f32 %v1385_v54, %v841_v36  ;;  %v867_v47 = vsub.f32 %v1389_v57, %v841_v36 }
 0x170   :  { %1204 = vpow2.f32 %v880_v29  ;;  %v879_v48 = vsub.f32 %v1394_v60, %v841_v36  ;;  %v891_v49 = vsub.f32 %v1404_v34, %v841_v36  ;;  %v903_v52 = vsub.f32 %v1408_v37, %v841_v36 }
 0x171   :  { %1206 = vpow2.f32 %v892_v31  ;;  %v846_v56 = vmul.f32 1.442695, %v843_v43  ;;  %v858_v58 = vmul.f32 1.442695, %v855_v44  ;;  %v915_v59 = vsub.f32 %v1414_v41, %v841_v36 }
 0x172   :  { %1208 = vpow2.f32 %v904_v33  ;;  %v927_v61 = vsub.f32 %v1418_v45, %v841_v36  ;;  %v939_v62 = vsub.f32 %v1428_v12, %v841_v36  ;;  %v870_v63 = vmul.f32 1.442695, %v867_v47 }
 0x173   :  { %1210 = vpow2.f32 %v916_v32  ;;  %v951_v1 = vsub.f32 %v1432_v0, %v841_v36  ;;  %v882_v2 = vmul.f32 1.442695, %v879_v48  ;;  %v894_v4 = vmul.f32 1.442695, %v891_v49 }
 0x174   :  { %1212 = vpow2.f32 %v928_v38  ;;  %v906_v8 = vmul.f32 1.442695, %v903_v52  ;;  %v918_v14 = vmul.f32 1.442695, %v915_v59  ;;  %v930_v17 = vmul.f32 1.442695, %v927_v61 }
 0x175   :  { %1214 = vpow2.f32 %v940_v39  ;;  %v942_v18 = vmul.f32 1.442695, %v939_v62 }
 0x176   :  { %1216 = vpow2.f32 %v952_v53 }
 0x177   :  { %v1199_v3 = vpop.eup %1198  ;;  %1218 = vpow2.f32 %v846_v56 }
 0x178   :  { %v1201_v5 = vpop.eup %1200  ;;  %v848_v6 = vmul.f32 %v1199_v3, %v1375_v42  ;;  %1220 = vpow2.f32 %v858_v58 }
 0x179   :  { %v1203_v10 = vpop.eup %1202  ;;  %v860_v11 = vmul.f32 %v1201_v5, %v1377_v46  ;;  %v864_v13 = vadd.f32 %v1201_v5, %v1199_v3  ;;  %1222 = vpow2.f32 %v870_v63  ;;  %v954_v46 = vmul.f32 1.442695, %v951_v1 }
 0x17a   :  { %v1205_v15 = vpop.eup %1204  ;;  %v872_v16 = vmul.f32 %v1203_v10, %v1381_v51  ;;  %1224 = vpow2.f32 %v882_v2 }
 0x17b   :  { %v1207_v19 = vpop.eup %1206  ;;  %v862_v20 = vadd.f32 %v860_v11, %v848_v6  ;;  %v876_v21 = vadd.f32 %v1203_v10, %v864_v13  ;;  %v884_v22 = vmul.f32 %v1205_v15, %v1387_v55  ;;  %1226 = vpow2.f32 %v894_v4 }
 0x17c   :  { %v1209_v42 = vpop.eup %1208  ;;  %v896_v23 = vmul.f32 %v1207_v19, %v1399_v24  ;;  %1228 = vpow2.f32 %v906_v8 }
 0x17d   :  { %v1211_v25 = vpop.eup %1210  ;;  %v874_v26 = vadd.f32 %v872_v16, %v862_v20  ;;  %v888_v27 = vadd.f32 %v1205_v15, %v876_v21  ;;  %v908_v29 = vmul.f32 %v1209_v42, %v1401_v28  ;;  %1230 = vpow2.f32 %v918_v14 }
 0x17e   :  { %v1213_v51 = vpop.eup %1212  ;;  %v920_v30 = vmul.f32 %v1211_v25, %v1406_v35  ;;  %1232 = vpow2.f32 %v930_v17 }
 0x17f   :  { %v1215_v31 = vpop.eup %1214  ;;  %v886_v33 = vadd.f32 %v884_v22, %v874_v26  ;;  %v900_v36 = vadd.f32 %v1207_v19, %v888_v27  ;;  %v932_v55 = vmul.f32 %v1213_v51, %v1412_v40  ;;  %1234 = vpow2.f32 %v942_v18 }
 0x180   :  { %v1217_v32 = vpop.eup %1216  ;;  %v944_v24 = vmul.f32 %v1215_v31, %v1423_v7  ;;  %1236 = vpow2.f32 %v954_v46 }
 0x181   :  { %v1219_v38 = vpop.eup %1218  ;;  %v898_v39 = vadd.f32 %v896_v23, %v886_v33  ;;  %v912_v43 = vadd.f32 %v1209_v42, %v900_v36  ;;  %v956_v28 = vmul.f32 %v1217_v32, %v1425_v9 }
 0x182   :  { %v1221_v44 = vpop.eup %1220  ;;  %v849_v47 = vmul.f32 %v1219_v38, %v1379_v50 }
 0x183   :  { %v1223_v35 = vpop.eup %1222  ;;  %v910_v48 = vadd.f32 %v908_v29, %v898_v39  ;;  %v924_v49 = vadd.f32 %v1211_v25, %v912_v43  ;;  %v861_v52 = vmul.f32 %v1221_v44, %v1385_v54  ;;  %v865_v53 = vadd.f32 %v1221_v44, %v1219_v38 }
 0x184   :  { %v1225_v40 = vpop.eup %1224  ;;  %v873_v56 = vmul.f32 %v1223_v35, %v1389_v57 }
 0x185   :  { %v1227_v58 = vpop.eup %1226  ;;  %v922_v7 = vadd.f32 %v920_v30, %v910_v48  ;;  %v936_v59 = vadd.f32 %v1213_v51, %v924_v49  ;;  %v863_v61 = vadd.f32 %v861_v52, %v849_v47  ;;  %v877_v62 = vadd.f32 %v1223_v35, %v865_v53 }
 0x186   :  { %v1229_v63 = vpop.eup %1228  ;;  %v885_v9 = vmul.f32 %v1225_v40, %v1394_v60  ;;  %v897_v1 = vmul.f32 %v1227_v58, %v1404_v34 }
 0x187   :  { %v1231_v50 = vpop.eup %1230  ;;  %v934_v2 = vadd.f32 %v932_v55, %v922_v7  ;;  %v948_v3 = vadd.f32 %v1215_v31, %v936_v59  ;;  %v875_v4 = vadd.f32 %v873_v56, %v863_v61  ;;  %v889_v5 = vadd.f32 %v1225_v40, %v877_v62 }
 0x188   :  { %v1233_v54 = vpop.eup %1232  ;;  %v909_v6 = vmul.f32 %v1229_v63, %v1408_v37  ;;  %v921_v57 = vmul.f32 %v1231_v50, %v1414_v41 }
 0x189   :  { %v1235_v8 = vpop.eup %1234  ;;  %v946_v10 = vadd.f32 %v944_v24, %v934_v2  ;;  %v960_v11 = vadd.f32 %v1217_v32, %v948_v3  ;;  %v887_v13 = vadd.f32 %v885_v9, %v875_v4  ;;  %v901_v14 = vadd.f32 %v1227_v58, %v889_v5 }
 0x18a   :  { %v1237_v15 = vpop.eup %1236  ;;  %v933_v60 = vmul.f32 %v1233_v54, %v1418_v45  ;;  %v945_v34 = vmul.f32 %v1235_v8, %v1428_v12 }
 0x18b   :  { %v958_v16 = vadd.f32 %v956_v28, %v946_v10  ;;  %1238 = vrcp.f32 %v960_v11  ;;  %v899_v17 = vadd.f32 %v897_v1, %v887_v13  ;;  %v913_v18 = vadd.f32 %v1229_v63, %v901_v14 }
 0x18c   :  { %v957_v19 = vmul.f32 %v1237_v15, %v1432_v0 }
 0x18d   :  { %v911_v20 = vadd.f32 %v909_v6, %v899_v17  ;;  %v925_v37 = vadd.f32 %v1231_v50, %v913_v18 }
 0x18f   :  { %v923_v21 = vadd.f32 %v921_v57, %v911_v20  ;;  %v937_v41 = vadd.f32 %v1233_v54, %v925_v37 }
 0x191   :  { %v935_v22 = vadd.f32 %v933_v60, %v923_v21  ;;  %v949_v42 = vadd.f32 %v1235_v8, %v937_v41 }
 0x193   :  { %v947_v23 = vadd.f32 %v945_v34, %v935_v22  ;;  %v961_v46 = vadd.f32 %v1237_v15, %v949_v42 }
 0x195   :  { %v1239_v25 = vpop.eup %1238  ;;  %v959_v26 = vadd.f32 %v957_v19, %v947_v23  ;;  %1240 = vrcp.f32 %v961_v46 }
 0x196   :  { %v964_v45 = vmul.f32 %v1239_v25, %v958_v16 }
 0x198   :  { %966 = vst [vmem:[#allocation7] sm:$0xff] %v964_v45 }
 0x19f   :  { %v1241_v12 = vpop.eup %1240 }
 0x1a0   :  { %v965_v27 = vmul.f32 %v1241_v12, %v959_v26 }
 0x1a2   :  { %967 = vst [vmem:[#allocation7 + $0x8] sm:$0xff] %v965_v27 }
 0x1a3   :  { %1297 = shalt.err (!%p1294_p6)
}
 0x1a4   :  { %s1298_s12 = scalar_lea.hbm %s1489_s2, 256 }
 0x1a5   :  { %p1299_p7 = scmp.ne.s32.totalorder %s1489_s2, %s1298_s12  ;;  %p1302_p8 = scmp.lt.u32.totalorder %s1298_s12, %s1489_s2 }
 0x1a7   :  { %p1304_p9 = pnand %p1302_p8, %p1299_p7 }
 0x1a9   :  { %1307 = shalt.err (!%p1304_p9)
}
 0x1aa   :  { %s1322_s17 = smov 128   ;;  %s1323_s18 = smov 8  }
 0x1ab   :  { %979 = dma.vmem_to_hbm [thread:$0]  %s974_s8, 256, %s1489_s2, [#allocation4], %s1322_s17, %s1322_s17, %s1323_s18  }
 0x1ac   :  { %1312 = dma.done.wait [#allocation4], 256  }
 0x1ad   :  { %1313 = vsyncadd [#allocation4], 4294967040 }
 0x1ae   :  { %983 = vsyncpa [#allocation3], 1 }
 0x1af   :  { %984 = vsyncpa [#allocation6], 1 }
 0x1b0   :  { %985 = vsyncpa [#allocation4], 1 }

</bundles_post_ra>
